<compile_context>
chip_gen: v7x
topology: tpu7x:2x2x1
jax: 0.10.0
libtpu: 0.0.40
codegen_flags: <defaults>
</compile_context>

<pallas_src>
import jax
import jax.numpy as jnp
from jax.experimental import pallas as pl
from jax.experimental.pallas import tpu as pltpu


# ----------------------------- fused Pallas kernel ---------------------------

def _make_gcn_kernel(n_layers):
    """Build the fused GCN forward kernel (transposed, node-on-lane layout).

    Kernel refs (in order):
      feat_t   (F_in, N)  f32   -- features^T
      a_hat_t  (N, N)     bf16  -- A_hat^T (normalized adjacency, transposed)
      w_lin    (H, F_in)  f32   -- nn.Linear weight, (out, in) layout
      b_lin    (H, 1)     f32
      [w_i (F_out_i, F_in_i) f32, b_i (F_out_i, 1) f32]   per GraphConv layer
      out_t    (C, N)     f32   -- logits^T                         (output)
      emb_t    (H, N)     f32   -- hidden state before last layer^T (output)
    """

    def kernel(*refs):
        feat_t_ref, a_hat_t_ref, w_lin_ref, b_lin_ref = refs[:4]
        layer_refs = refs[4:4 + 2 * n_layers]
        out_ref, emb_ref = refs[4 + 2 * n_layers:]

        # nn.Linear: h^T = W_lin @ x^T + b  -> (H, N); lane axis = nodes.
        h_t = jnp.dot(w_lin_ref[...], feat_t_ref[...],
                      preferred_element_type=jnp.float32) + b_lin_ref[...]

        for i in range(n_layers):
            w_ref = layer_refs[2 * i]
            b_ref = layer_refs[2 * i + 1]
            is_last = i == n_layers - 1
            if is_last:
                emb_ref[...] = h_t
            # TODO(synk): nn.Dropout (applied for i != 0) is identity in eval
            # mode; training-mode dropout would mask h_t here via
            # pltpu.prng_seed / pltpu.prng_random_bits.
            #
            # DGL GraphConv (norm='both'):
            #   out   = A_hat @ (h @ W) + b
            #   out^T = (W^T @ h^T) @ A_hat^T + b[:, None]
            z_t = jnp.dot(w_ref[...], h_t, preferred_element_type=jnp.float32)
            h_t = jnp.dot(z_t.astype(a_hat_t_ref.dtype), a_hat_t_ref[...],
                          preferred_element_type=jnp.float32) + b_ref[...]
            if not is_last:
                h_t = jnp.maximum(h_t, 0.0)

        out_ref[...] = h_t

    return kernel


# ------------------------------- wrapper --------------------------------------

def gcn_forward(features, a_hat, params):
    """Fused GCN forward.

    features: (N, F_in) f32; a_hat: (N, N) f32 dense normalized adjacency.
    params:   {'linear': (W_lin.T (F_in, H), b (H,)),
               'layers': [(W (F_in_l, F_out_l), b (F_out_l,)), ...]}
    Returns (logits (N, C), emb (N, H)).
    """
    n_nodes, _ = features.shape
    w_lin_t, b_lin = params["linear"]
    n_hidden = w_lin_t.shape[1]
    layers = params["layers"]
    n_layers = len(layers)
    n_classes = layers[-1][0].shape[1]

    # TODO(synk): for real GraphAKD graphs (N >> 256) A_hat must be tiled over
    # node columns (budget against v7x's 64 MiB VMEM) or kept sparse with a
    # CSR-gather path; at these shapes everything fits VMEM, so run fully fused.

    # Lane-dense transposed layout: node axis last -> maps to the 128-lane axis.
    inputs = [
        features.T.astype(jnp.float32),                      # (F_in, N)
        a_hat.T.astype(jnp.bfloat16),                        # (N, N)   bf16 MXU operand
        w_lin_t.T.astype(jnp.float32),                       # (H, F_in)
        b_lin.reshape(-1, 1).astype(jnp.float32),            # (H, 1)
    ]
    for w, b in layers:
        inputs.append(w.T.astype(jnp.float32))               # (F_out, F_in)
        inputs.append(b.reshape(-1, 1).astype(jnp.float32))  # (F_out, 1)

    vmem = pl.BlockSpec(memory_space=pltpu.MemorySpace.VMEM)
    out_t, emb_t = pl.pallas_call(
        _make_gcn_kernel(n_layers),
        out_shape=(jax.ShapeDtypeStruct((n_classes, n_nodes), jnp.float32),
                   jax.ShapeDtypeStruct((n_hidden, n_nodes), jnp.float32)),
        in_specs=[vmem] * len(inputs),
        out_specs=(vmem, vmem),
    )(*inputs)

    # Single transpose back to node-major at the very end (layout plumbing in XLA).
    return out_t.T, emb_t.T


# ------------------------------- reference -------------------------------------

def gcn_forward_ref(features, a_hat, params, *, mirror_bf16=False):
    """Pure-JAX reference.  mirror_bf16=True reproduces the kernel's bf16
    rounding of the adjacency-contraction operands (f32 accumulation)."""
    w_lin_t, b_lin = params["linear"]
    h = features @ w_lin_t + b_lin
    a = a_hat
    if mirror_bf16:
        a = a.astype(jnp.bfloat16).astype(jnp.float32)
    n_layers = len(params["layers"])
    emb = None
    for i, (w, b) in enumerate(params["layers"]):
        if i == n_layers - 1:
            emb = h
        z = h @ w
        if mirror_bf16:
            z = z.astype(jnp.bfloat16).astype(jnp.float32)
        out = a @ z + b
        if i != n_layers - 1:
            out = jnp.maximum(out, 0.0)
        h = out
    return h, emb


# --------------------------------- main -----------------------------------------

if __name__ == "__main__":
    N_NODES = 256
    IN_FEATS = 32     # must equal n_hidden for the original forward to be shape-valid
    N_HIDDEN = 32
    N_CLASSES = 8
    # GCN(n_layers=2) -> 3 GraphConv layers total, as in the PyTorch module.

    key = jax.random.PRNGKey(0)
    keys = jax.random.split(key, 16)

    # node features
    features = jax.random.normal(keys[0], (N_NODES, IN_FEATS), jnp.float32)

    # synthetic symmetric graph with self-loops -> dense normalized adjacency A_hat
    adj = (jax.random.uniform(keys[1], (N_NODES, N_NODES)) < 0.05).astype(jnp.float32)
    adj = jnp.maximum(adj, adj.T)
    adj = jnp.maximum(adj, jnp.eye(N_NODES, dtype=jnp.float32))
    deg = adj.sum(axis=1)
    d_inv_sqrt = 1.0 / jnp.sqrt(deg)
    a_hat = d_inv_sqrt[:, None] * adj * d_inv_sqrt[None, :]

    # deterministic parameter init (synthetic, not a checkpoint)
    def winit(k, shape, scale=0.1):
        return scale * jax.random.normal(k, shape, jnp.float32)

    params = {
        # nn.Linear(in_feats, n_hidden): weight is (n_hidden, in_feats) -> store W.T
        "linear": (winit(keys[2], (IN_FEATS, N_HIDDEN)),
                   winit(keys[3], (N_HIDDEN,))),
        "layers": [
            # GraphConv(in_feats, n_hidden, activation=relu)
            (winit(keys[4], (IN_FEATS, N_HIDDEN)), winit(keys[5], (N_HIDDEN,))),
            # GraphConv(n_hidden, n_hidden, activation=relu)
            (winit(keys[6], (N_HIDDEN, N_HIDDEN)), winit(keys[7], (N_HIDDEN,))),
            # GraphConv(n_hidden, n_classes)  (no activation)
            (winit(keys[8], (N_HIDDEN, N_CLASSES)), winit(keys[9], (N_CLASSES,))),
        ],
    }

    fwd = jax.jit(gcn_forward)
    out, emb = fwd(features, a_hat, params)
    out, emb = jax.block_until_ready((out, emb))

    assert out.shape == (N_NODES, N_CLASSES), out.shape
    assert emb.shape == (N_NODES, N_HIDDEN), emb.shape

    # Tight check vs. a reference that mirrors the kernel's bf16 adjacency operands.
    ref_out, ref_emb = gcn_forward_ref(features, a_hat, params, mirror_bf16=True)
    assert jnp.allclose(out, ref_out, atol=1e-3, rtol=1e-3), "out mismatch (mirrored ref)"
    assert jnp.allclose(emb, ref_emb, atol=1e-3, rtol=1e-3), "emb mismatch (mirrored ref)"

    # Looser check vs. the pure-f32 module semantics (only bf16 adjacency rounding differs).
    f32_out, f32_emb = gcn_forward_ref(features, a_hat, params, mirror_bf16=False)
    assert jnp.allclose(out, f32_out, atol=2e-2, rtol=2e-2), "out drift vs f32 reference"
    assert jnp.allclose(emb, f32_emb, atol=2e-2, rtol=2e-2), "emb drift vs f32 reference"

    print("KERNEL_OK")
</pallas_src>

<mosaic_0001>
module attributes {stable_mosaic.version = 11 : i64} {
  func.func @kernel(%arg0: memref<32x256xf32, #tpu.memory_space<vmem>>, %arg1: memref<256x256xbf16, #tpu.memory_space<vmem>>, %arg2: memref<32x32xf32, #tpu.memory_space<vmem>>, %arg3: memref<32x1xf32, #tpu.memory_space<vmem>>, %arg4: memref<32x32xf32, #tpu.memory_space<vmem>>, %arg5: memref<32x1xf32, #tpu.memory_space<vmem>>, %arg6: memref<32x32xf32, #tpu.memory_space<vmem>>, %arg7: memref<32x1xf32, #tpu.memory_space<vmem>>, %arg8: memref<8x32xf32, #tpu.memory_space<vmem>>, %arg9: memref<8x1xf32, #tpu.memory_space<vmem>>, %arg10: memref<8x256xf32, #tpu.memory_space<vmem>>, %arg11: memref<32x256xf32, #tpu.memory_space<vmem>>) attributes {dimension_semantics = [], scalar_prefetch = 0 : i64, scratch_operands = 0 : i64, tpu.core_type = #tpu.core_type<tc>} {
    %c0 = arith.constant 0 : index
    %c0_0 = arith.constant 0 : index
    %0 = vector.load %arg2[%c0, %c0_0] : memref<32x32xf32, #tpu.memory_space<vmem>>, vector<32x32xf32>
    %c0_1 = arith.constant 0 : index
    %c0_2 = arith.constant 0 : index
    %1 = vector.load %arg0[%c0_1, %c0_2] : memref<32x256xf32, #tpu.memory_space<vmem>>, vector<32x256xf32>
    %cst = arith.constant dense<0.000000e+00> : vector<32x256xf32>
    %2 = tpu.matmul %0, %1, %cst {dimension_numbers = #tpu.dot_dimension_numbers<[1], [0], [0], [1], [0, 0, 1, 1], [], []>} : vector<32x32xf32>, vector<32x256xf32>, vector<32x256xf32> -> vector<32x256xf32>
    %c0_3 = arith.constant 0 : index
    %c0_4 = arith.constant 0 : index
    %3 = vector.load %arg3[%c0_3, %c0_4] : memref<32x1xf32, #tpu.memory_space<vmem>>, vector<32x1xf32>
    %4 = vector.broadcast %3 : vector<32x1xf32> to vector<32x256xf32>
    %5 = arith.addf %2, %4 : vector<32x256xf32>
    %c0_5 = arith.constant 0 : index
    %c0_6 = arith.constant 0 : index
    %6 = vector.load %arg4[%c0_5, %c0_6] : memref<32x32xf32, #tpu.memory_space<vmem>>, vector<32x32xf32>
    %cst_7 = arith.constant dense<0.000000e+00> : vector<32x256xf32>
    %7 = tpu.matmul %6, %5, %cst_7 {dimension_numbers = #tpu.dot_dimension_numbers<[1], [0], [0], [1], [0, 0, 1, 1], [], []>} : vector<32x32xf32>, vector<32x256xf32>, vector<32x256xf32> -> vector<32x256xf32>
    %8 = arith.truncf %7 : vector<32x256xf32> to vector<32x256xbf16>
    %c0_8 = arith.constant 0 : index
    %c0_9 = arith.constant 0 : index
    %9 = vector.load %arg1[%c0_8, %c0_9] : memref<256x256xbf16, #tpu.memory_space<vmem>>, vector<256x256xbf16>
    %cst_10 = arith.constant dense<0.000000e+00> : vector<32x256xf32>
    %10 = tpu.matmul %8, %9, %cst_10 {dimension_numbers = #tpu.dot_dimension_numbers<[1], [0], [0], [1], [0, 0, 1, 1], [], []>} : vector<32x256xbf16>, vector<256x256xbf16>, vector<32x256xf32> -> vector<32x256xf32>
    %c0_11 = arith.constant 0 : index
    %c0_12 = arith.constant 0 : index
    %11 = vector.load %arg5[%c0_11, %c0_12] : memref<32x1xf32, #tpu.memory_space<vmem>>, vector<32x1xf32>
    %12 = vector.broadcast %11 : vector<32x1xf32> to vector<32x256xf32>
    %13 = arith.addf %10, %12 : vector<32x256xf32>
    %cst_13 = arith.constant 0.000000e+00 : f32
    %14 = vector.broadcast %cst_13 : f32 to vector<32x256xf32>
    %15 = arith.maximumf %13, %14 : vector<32x256xf32>
    %c0_14 = arith.constant 0 : index
    %c0_15 = arith.constant 0 : index
    %16 = vector.load %arg6[%c0_14, %c0_15] : memref<32x32xf32, #tpu.memory_space<vmem>>, vector<32x32xf32>
    %cst_16 = arith.constant dense<0.000000e+00> : vector<32x256xf32>
    %17 = tpu.matmul %16, %15, %cst_16 {dimension_numbers = #tpu.dot_dimension_numbers<[1], [0], [0], [1], [0, 0, 1, 1], [], []>} : vector<32x32xf32>, vector<32x256xf32>, vector<32x256xf32> -> vector<32x256xf32>
    %18 = arith.truncf %17 : vector<32x256xf32> to vector<32x256xbf16>
    %c0_17 = arith.constant 0 : index
    %c0_18 = arith.constant 0 : index
    %19 = vector.load %arg1[%c0_17, %c0_18] : memref<256x256xbf16, #tpu.memory_space<vmem>>, vector<256x256xbf16>
    %cst_19 = arith.constant dense<0.000000e+00> : vector<32x256xf32>
    %20 = tpu.matmul %18, %19, %cst_19 {dimension_numbers = #tpu.dot_dimension_numbers<[1], [0], [0], [1], [0, 0, 1, 1], [], []>} : vector<32x256xbf16>, vector<256x256xbf16>, vector<32x256xf32> -> vector<32x256xf32>
    %c0_20 = arith.constant 0 : index
    %c0_21 = arith.constant 0 : index
    %21 = vector.load %arg7[%c0_20, %c0_21] : memref<32x1xf32, #tpu.memory_space<vmem>>, vector<32x1xf32>
    %22 = vector.broadcast %21 : vector<32x1xf32> to vector<32x256xf32>
    %23 = arith.addf %20, %22 : vector<32x256xf32>
    %cst_22 = arith.constant 0.000000e+00 : f32
    %24 = vector.broadcast %cst_22 : f32 to vector<32x256xf32>
    %25 = arith.maximumf %23, %24 : vector<32x256xf32>
    %c0_23 = arith.constant 0 : index
    %c0_24 = arith.constant 0 : index
    %26 = vector.load %arg11[%c0_23, %c0_24] : memref<32x256xf32, #tpu.memory_space<vmem>>, vector<32x256xf32>
    tpu.vector_store %arg11[%c0_23, %c0_24], %25 {strides = array<i32>} : memref<32x256xf32, #tpu.memory_space<vmem>>, vector<32x256xf32>,
    %c0_25 = arith.constant 0 : index
    %c0_26 = arith.constant 0 : index
    %27 = vector.load %arg8[%c0_25, %c0_26] : memref<8x32xf32, #tpu.memory_space<vmem>>, vector<8x32xf32>
    %cst_27 = arith.constant dense<0.000000e+00> : vector<8x256xf32>
    %28 = tpu.matmul %27, %25, %cst_27 {dimension_numbers = #tpu.dot_dimension_numbers<[1], [0], [0], [1], [0, 0, 1, 1], [], []>} : vector<8x32xf32>, vector<32x256xf32>, vector<8x256xf32> -> vector<8x256xf32>
    %29 = arith.truncf %28 : vector<8x256xf32> to vector<8x256xbf16>
    %c0_28 = arith.constant 0 : index
    %c0_29 = arith.constant 0 : index
    %30 = vector.load %arg1[%c0_28, %c0_29] : memref<256x256xbf16, #tpu.memory_space<vmem>>, vector<256x256xbf16>
    %cst_30 = arith.constant dense<0.000000e+00> : vector<8x256xf32>
    %31 = tpu.matmul %29, %30, %cst_30 {dimension_numbers = #tpu.dot_dimension_numbers<[1], [0], [0], [1], [0, 0, 1, 1], [], []>} : vector<8x256xbf16>, vector<256x256xbf16>, vector<8x256xf32> -> vector<8x256xf32>
    %c0_31 = arith.constant 0 : index
    %c0_32 = arith.constant 0 : index
    %32 = vector.load %arg9[%c0_31, %c0_32] : memref<8x1xf32, #tpu.memory_space<vmem>>, vector<8x1xf32>
    %33 = vector.broadcast %32 : vector<8x1xf32> to vector<8x256xf32>
    %34 = arith.addf %31, %33 : vector<8x256xf32>
    %c0_33 = arith.constant 0 : index
    %c0_34 = arith.constant 0 : index
    %35 = vector.load %arg10[%c0_33, %c0_34] : memref<8x256xf32, #tpu.memory_space<vmem>>, vector<8x256xf32>
    tpu.vector_store %arg10[%c0_33, %c0_34], %34 {strides = array<i32>} : memref<8x256xf32, #tpu.memory_space<vmem>>, vector<8x256xf32>,
    return
  }
}

</mosaic_0001>

<bundles_post_ra>
// kernel: gcn_forward.1
= control target key start
LH: loop header
LB: loop body
LE: loop exit
PB: predicated region body
PF: predicated region fallthrough
CT: control target
= control target key end

     0   :  { %17 = vsyncpa [#allocation3], 0  ;;  %v1326_v7 = vmov 0.0   ;;  %v1327_v8 = vmov 0   ;;  %vm75_vm0 = vcmask 261120   ;;  %s1800_s0 = inlined_call_operand.vmem [shape: f32[32,256], index: 0, kind: input, shape index: {}]   ;;  %s1801_s1 = inlined_call_operand.vmem [shape: bf16[256,256], index: 1, kind: input, shape index: {}]   ;;  %s1802_s2 = inlined_call_operand.vmem [shape: f32[32,32], index: 2, kind: input, shape index: {}]   ;;  %s1803_s3 = inlined_call_operand.vmem [shape: f32[32,1], index: 3, kind: input, shape index: {}]   ;;  %s1804_s4 = inlined_call_operand.vmem [shape: f32[32,32], index: 4, kind: input, shape index: {}]   ;;  %s1805_s5 = inlined_call_operand.vmem [shape: f32[32,1], index: 5, kind: input, shape index: {}]   ;;  %s1806_s6 = inlined_call_operand.vmem [shape: f32[32,32], index: 6, kind: input, shape index: {}]   ;;  %s1807_s7 = inlined_call_operand.vmem [shape: f32[32,1], index: 7, kind: input, shape index: {}]   ;;  %s1808_s8 = inlined_call_operand.vmem [shape: f32[8,32], index: 8, kind: input, shape index: {}]   ;;  %s1809_s9 = inlined_call_operand.vmem [shape: f32[8,1], index: 9, kind: input, shape index: {}]   ;;  %s1810_s10 = inlined_call_operand.hbm [shape: f32[8,256], index: 10, kind: output, shape index: {0}]   ;;  %s1811_s11 = inlined_call_operand.hbm [shape: f32[32,256], index: 11, kind: output, shape index: {1}]  }
   0x1   :  { %v44_v0 = vld [vmem:[%s1800_s0 + $0x8] sm:$0xff]  ;;  %v46_v1 = vld [vmem:[%s1800_s0 + $0x18] sm:$0xff]  ;;  %v43_v2 = vld [vmem:[%s1800_s0] sm:$0xff]  ;;  %152 = vmatprep.mubr.f32.mxu1 %v1326_v7  ;;  %1228 = vset.pattern.permute.xlu0 %v1327_v8 }
   0x2   :  { %v1190_v3 = vpack.c.bf16 %v46_v1, %v44_v0  ;;  %v45_v4 = vld [vmem:[%s1800_s0 + $0x10] sm:$0xff]  ;;  %v48_v5 = vld [vmem:[%s1800_s0 + $0x28] sm:$0xff]  ;;  %v50_v6 = vld [vmem:[%s1800_s0 + $0x38] sm:$0xff]  ;;  %1229 = vset.pattern.permute.xlu1 %v1327_v8 }
   0x3   :  { %v1192_v9 = vpack.c.bf16 %v45_v4, %v43_v2  ;;  %v1194_v10 = vpack.c.bf16 %v50_v6, %v48_v5  ;;  %v47_v11 = vld [vmem:[%s1800_s0 + $0x20] sm:$0xff]  ;;  %v49_v12 = vld [vmem:[%s1800_s0 + $0x30] sm:$0xff]  ;;  %v52_v16 = vld [vmem:[%s1803_s3 + $0x8] sm:$0xff] }
   0x4   :  { %1191 = vmatprep.subr.bf16.mxu1 %v1190_v3  ;;  %v1196_v13 = vpack.c.bf16 %v49_v12, %v47_v11  ;;  %v51_v14 = vld [vmem:[%s1803_s3] sm:$0xff]  ;;  %v53_v15 = vld [vmem:[%s1803_s3 + $0x10] sm:$0xff]  ;;  %v54_v18 = vld [vmem:[%s1803_s3 + $0x18] sm:$0xff] }
   0x5   :  { %1193 = vmatpush1.bf16.msra.mxu1 %v1192_v9  ;;  %57 = vperm.xlu0 %1228, %v51_v14   ;;  %v39_v17 = vld [vmem:[%s1802_s2] sm:$0xff]  ;;  %v319_v20 = vld [vmem:[%s1805_s5 + $0x8] sm:$0xff]  ;;  %v320_v22 = vld [vmem:[%s1805_s5 + $0x10] sm:$0xff] }
   0x6   :  { %1195 = vmatprep.subr.bf16.mxu1 %v1194_v10  ;;  %67 = vperm.xlu1 %1229, %v53_v15   ;;  %v318_v19 = vld [vmem:[%s1805_s5] sm:$0xff]  ;;  %v40_v21 = vld [vmem:[%s1802_s2 + $0x8] sm:$0xff]  ;;  %v321_v23 = vld [vmem:[%s1805_s5 + $0x18] sm:$0xff] }
   0x7   :  { %v41_v24 = vld [vmem:[%s1802_s2 + $0x10] sm:$0xff]  ;;  %v672_v25 = vld [vmem:[%s1807_s7] sm:$0xff]  ;;  %v673_v26 = vld [vmem:[%s1807_s7 + $0x8] sm:$0xff] }
   0x9   :  { %1197 = vmatpush1.bf16.msra.mxu1 %v1196_v13  ;;  %62 = vperm.xlu0 %1228, %v52_v16  }
   0xa   :  { %72 = vperm.xlu1 %1229, %v54_v18  }
   0xc   :  { %1113 = vmatmul.mubr.msk.f32.vlgmr.msra.gmra.mrb[0].mxu1 %vm75_vm0, %v39_v17 }
   0xd   :  { %158 = vmatprep.mubr.f32.mxu1 %v1326_v7  ;;  %324 = vperm.xlu0 %1228, %v318_v19  }
   0xe   :  { %329 = vperm.xlu1 %1229, %v319_v20  }
  0x10   :  { %1114 = vmatmul.mubr.msk.f32.gmra.mrb[2].mxu1 %vm75_vm0, %v40_v21 }
  0x11   :  { %164 = vmatprep.mubr.f32.mxu1 %v1326_v7  ;;  %334 = vperm.xlu0 %1228, %v320_v22  }
  0x12   :  { %339 = vperm.xlu1 %1229, %v321_v23  }
  0x14   :  { %1115 = vmatmul.mubr.msk.f32.gmra.mrb[4].mxu1 %vm75_vm0, %v41_v24 }
  0x15   :  { %18 = vsyncpa [#allocation5], 0  ;;  %170 = vmatprep.mubr.f32.mxu1 %v1326_v7  ;;  %v42_v27 = vld [vmem:[%s1802_s2 + $0x18] sm:$0xff]  ;;  %678 = vperm.xlu0 %1228, %v672_v25   ;;  %v674_v28 = vld [vmem:[%s1807_s7 + $0x10] sm:$0xff] }
  0x16   :  { %683 = vperm.xlu1 %1229, %v673_v26   ;;  %v675_v29 = vld [vmem:[%s1807_s7 + $0x18] sm:$0xff]  ;;  %v874_v30 = vld [vmem:[%s1809_s9] sm:$0xff]  ;;  %v178_v21 = vld [vmem:[%s1804_s4 + $0x8] sm:$0xff]  ;;  %s1328_s7 = smov [#allocation4]  }
  0x17   :  { %v1479_v31 = vld [vmem:[%s1801_s1 + $0x4] ss:$8 sps:$4 sm:$0xff]   ;;  %v1484_v32 = vld [vmem:[%s1801_s1] ss:$8 sps:$4 sm:$0xff]   ;;  %v1489_v33 = vld [vmem:[%s1801_s1 + $0x14] ss:$8 sps:$4 sm:$0xff]  }
  0x18   :  { %1116 = vmatmul.mubr.msk.f32.gmra.mrb[6].mxu1 %vm75_vm0, %v42_v27  ;;  %502 = vmatprep.subr.bf16.mxu0 %v1479_v31  ;;  %v1496_v34 = vld [vmem:[%s1801_s1 + $0x10] ss:$8 sps:$4 sm:$0xff]   ;;  %v1502_v35 = vld [vmem:[%s1801_s1 + $0x24] ss:$8 sps:$4 sm:$0xff]   ;;  %v1508_v36 = vld [vmem:[%s1801_s1 + $0x20] ss:$8 sps:$4 sm:$0xff]  }
  0x19   :  { %257 = vmatprep.mubr.f32.mxu1 %v1326_v7  ;;  %688 = vperm.xlu0 %1228, %v674_v28   ;;  %v1514_v37 = vld [vmem:[%s1801_s1 + $0x34] ss:$8 sps:$4 sm:$0xff]   ;;  %v1520_v38 = vld [vmem:[%s1801_s1 + $0x30] ss:$8 sps:$4 sm:$0xff]   ;;  %v1526_v39 = vld [vmem:[%s1801_s1 + $0x44] ss:$8 sps:$4 sm:$0xff]  }
  0x1a   :  { %693 = vperm.xlu1 %1229, %v675_v29   ;;  %503 = vmatpush1.bf16.msra.mxu0 %v1484_v32  ;;  %v1532_v40 = vld [vmem:[%s1801_s1 + $0x40] ss:$8 sps:$4 sm:$0xff]   ;;  %v1538_v41 = vld [vmem:[%s1801_s1 + $0x54] ss:$8 sps:$4 sm:$0xff]   ;;  %v1544_v42 = vld [vmem:[%s1801_s1 + $0x50] ss:$8 sps:$4 sm:$0xff]  }
  0x1b   :  { %504 = vmatprep.subr.bf16.mxu0 %v1489_v33  ;;  %v1550_v43 = vld [vmem:[%s1801_s1 + $0x64] ss:$8 sps:$4 sm:$0xff]   ;;  %v1556_v44 = vld [vmem:[%s1801_s1 + $0x60] ss:$8 sps:$4 sm:$0xff]   ;;  %v1562_v45 = vld [vmem:[%s1801_s1 + $0x74] ss:$8 sps:$4 sm:$0xff]  }
  0x1c   :  { %v1568_v46 = vld [vmem:[%s1801_s1 + $0x70] ss:$8 sps:$4 sm:$0xff]   ;;  %v1574_v47 = vld [vmem:[%s1801_s1 + $0x84] ss:$8 sps:$4 sm:$0xff]   ;;  %v1580_v48 = vld [vmem:[%s1801_s1 + $0x80] ss:$8 sps:$4 sm:$0xff]  }
  0x1d   :  { %877 = vperm.xlu0 %1228, %v874_v30   ;;  %v1586_v49 = vld [vmem:[%s1801_s1 + $0x94] ss:$8 sps:$4 sm:$0xff]   ;;  %v1592_v50 = vld [vmem:[%s1801_s1 + $0x90] ss:$8 sps:$4 sm:$0xff]   ;;  %v1598_v51 = vld [vmem:[%s1801_s1 + $0xa4] ss:$8 sps:$4 sm:$0xff]  }
  0x1e   :  { %505 = vmatpush1.bf16.msra.mxu0 %v1496_v34  ;;  %v1604_v52 = vld [vmem:[%s1801_s1 + $0xa0] ss:$8 sps:$4 sm:$0xff]   ;;  %v1610_v53 = vld [vmem:[%s1801_s1 + $0xb4] ss:$8 sps:$4 sm:$0xff]   ;;  %v1616_v54 = vld [vmem:[%s1801_s1 + $0xb0] ss:$8 sps:$4 sm:$0xff]  }
  0x1f   :  { %506 = vmatprep.subr.bf16.mxu0 %v1502_v35  ;;  %v1622_v55 = vld [vmem:[%s1801_s1 + $0xc4] ss:$8 sps:$4 sm:$0xff]   ;;  %v1628_v56 = vld [vmem:[%s1801_s1 + $0xc0] ss:$8 sps:$4 sm:$0xff]   ;;  %v1634_v57 = vld [vmem:[%s1801_s1 + $0xd4] ss:$8 sps:$4 sm:$0xff]  }
  0x20   :  { %v1640_v58 = vld [vmem:[%s1801_s1 + $0xd0] ss:$8 sps:$4 sm:$0xff]   ;;  %v177_v20 = vld [vmem:[%s1804_s4] sm:$0xff]  ;;  %v1679_v26 = vld [vmem:[%s1801_s1 + $0xf4] ss:$8 sps:$4 sm:$0xff]   ;;  %s1098_s28 = sshll.u32 %s1328_s7, 4  ;;  %s1099_s28 = int_to_ptr.vmem [resolvable:$true] %s1098_s28 }
  0x21   :  { %v179_v22 = vld [vmem:[%s1804_s4 + $0x10] sm:$0xff]  ;;  %v180_v23 = vld [vmem:[%s1804_s4 + $0x18] sm:$0xff]  ;;  %v1667_v24 = vld [vmem:[%s1801_s1 + $0xe4] ss:$8 sps:$4 sm:$0xff]   ;;  %s1278_s9 = scalar_lea.vmem %s1099_s28, 1024  ;;  %p1283_p1 = scmp.lt.s32.totalorder %s1099_s28, %s1099_s28 }
  0x22   :  { %507 = vmatpush1.bf16.msra.mxu0 %v1508_v36  ;;  %v1672_v25 = vld [vmem:[%s1801_s1 + $0xe0] ss:$8 sps:$4 sm:$0xff]   ;;  %v1684_v27 = vld [vmem:[%s1801_s1 + $0xf0] ss:$8 sps:$4 sm:$0xff]   ;;  %p1279_p0 = scmp.ne.s32.totalorder %s1099_s28, %s1278_s9  ;;  %p1284_p2 = scmp.lt.s32.totalorder %s1278_s9, %s1278_s9 }
  0x23   :  { %508 = vmatprep.subr.bf16.mxu0 %v1514_v37 }
  0x24   :  { %p1285_p3 = por %p1284_p2, %p1283_p1 }
  0x26   :  { %509 = vmatpush1.bf16.msra.mxu0 %v1520_v38  ;;  %p1286_p4 = pnand %p1285_p3, %p1279_p0 }
  0x27   :  { %510 = vmatprep.subr.bf16.mxu0 %v1526_v39 }
  0x2a   :  { %511 = vmatpush1.bf16.msra.mxu0 %v1532_v40 }
  0x2b   :  { %512 = vmatprep.subr.bf16.mxu0 %v1538_v41 }
  0x2e   :  { %513 = vmatpush1.bf16.msra.mxu0 %v1544_v42 }
  0x2f   :  { %514 = vmatprep.subr.bf16.mxu0 %v1550_v43 }
  0x32   :  { %515 = vmatpush1.bf16.msra.mxu0 %v1556_v44 }
  0x33   :  { %516 = vmatprep.subr.bf16.mxu0 %v1562_v45 }
  0x36   :  { %517 = vmatpush1.bf16.msra.mxu0 %v1568_v46 }
  0x37   :  { %518 = vmatprep.subr.bf16.mxu0 %v1574_v47 }
  0x3a   :  { %519 = vmatpush1.bf16.msra.mxu0 %v1580_v48 }
  0x3b   :  { %520 = vmatprep.subr.bf16.mxu0 %v1586_v49 }
  0x3e   :  { %521 = vmatpush1.bf16.msra.mxu0 %v1592_v50 }
  0x3f   :  { %522 = vmatprep.subr.bf16.mxu0 %v1598_v51 }
  0x42   :  { %523 = vmatpush1.bf16.msra.mxu0 %v1604_v52 }
  0x43   :  { %524 = vmatprep.subr.bf16.mxu0 %v1610_v53 }
  0x46   :  { %525 = vmatpush1.bf16.msra.mxu0 %v1616_v54 }
  0x47   :  { %526 = vmatprep.subr.bf16.mxu0 %v1622_v55 }
  0x4a   :  { %527 = vmatpush1.bf16.msra.mxu0 %v1628_v56 }
  0x4b   :  { %528 = vmatprep.subr.bf16.mxu0 %v1634_v57 }
  0x4e   :  { %529 = vmatpush1.bf16.msra.mxu0 %v1640_v58 }
  0x4f   :  { %530 = vmatprep.subr.bf16.mxu0 %v1667_v24 }
  0x52   :  { %531 = vmatpush1.bf16.msra.mxu0 %v1672_v25 }
  0x53   :  { %532 = vmatprep.subr.bf16.mxu0 %v1679_v26 }
  0x56   :  { %533 = vmatpush1.bf16.msra.mxu0 %v1684_v27 }
  0x57   :  { %1040 = vmatprep.subr.bf16.mxu0 %v1479_v31 }
  0x84   :  { %v58_v59 = vpop.permute.xlu0 %57 }
  0x85   :  { %v68_v3 = vpop.permute.xlu1 %67 }
  0x88   :  { %v63_v62 = vpop.permute.xlu0 %62 }
  0x89   :  { %v73_v11 = vpop.permute.xlu1 %72 }
  0xdf   :  { %v154_v60 = vpop.f32.mrb[0].mxu1 }
  0xe0   :  { %v156_v61 = vpop.f32.mrb[1].mxu1  ;;  %v155_v0 = vadd.f32 %v154_v60, %v58_v59 }
  0xe1   :  { %v157_v4 = vadd.f32 %v156_v61, %v58_v59 }
  0xe3   :  { %v160_v63 = vpop.f32.mrb[2].mxu1 }
  0xe4   :  { %v161_v1 = vadd.f32 %v160_v63, %v63_v62  ;;  %v162_v2 = vpop.f32.mrb[3].mxu1 }
  0xe5   :  { %v163_v5 = vadd.f32 %v162_v2, %v63_v62 }
  0xe6   :  { %v1200_v6 = vpack.c.bf16 %v161_v1, %v155_v0 }
  0xe7   :  { %v1198_v8 = vpack.c.bf16 %v163_v5, %v157_v4  ;;  %v166_v9 = vpop.f32.mrb[4].mxu1  ;;  %v325_v4 = vpop.permute.xlu0 %324 }
  0xe8   :  { %v168_v10 = vpop.f32.mrb[5].mxu1  ;;  %v167_v13 = vadd.f32 %v166_v9, %v68_v3  ;;  %v330_v9 = vpop.permute.xlu1 %329 }
  0xe9   :  { %1199 = vmatprep.subr.bf16.mxu1 %v1198_v8  ;;  %v169_v16 = vadd.f32 %v168_v10, %v68_v3 }
  0xea   :  { %1201 = vmatpush1.bf16.msra.mxu1 %v1200_v6 }
  0xeb   :  { %v172_v12 = vpop.f32.mrb[6].mxu1 }
  0xec   :  { %v173_v14 = vadd.f32 %v172_v12, %v73_v11  ;;  %v174_v15 = vpop.f32.mrb[7].mxu1 }
  0xed   :  { %v175_v17 = vadd.f32 %v174_v15, %v73_v11 }
  0xee   :  { %v1204_v18 = vpack.c.bf16 %v173_v14, %v167_v13 }
  0xef   :  { %v1202_v19 = vpack.c.bf16 %v175_v17, %v169_v16 }
  0xf1   :  { %1203 = vmatprep.subr.bf16.mxu1 %v1202_v19 }
  0xf2   :  { %1205 = vmatpush1.bf16.msra.mxu1 %v1204_v18 }
  0xf5   :  { %1117 = vmatmul.mubr.msk.f32.vlgmr.msra.gmra.mrb[8].mxu1 %vm75_vm0, %v177_v20  ;;  %v335_v20 = vpop.permute.xlu0 %334 }
  0xf6   :  { %263 = vmatprep.mubr.f32.mxu1 %v1326_v7 }
  0xf9   :  { %1118 = vmatmul.mubr.msk.f32.gmra.mrb[10].mxu1 %vm75_vm0, %v178_v21 }
  0xfa   :  { %269 = vmatprep.mubr.f32.mxu1 %v1326_v7 }
  0xfd   :  { %1119 = vmatmul.mubr.msk.f32.gmra.mrb[12].mxu1 %vm75_vm0, %v179_v22 }
  0xfe   :  { %275 = vmatprep.mubr.f32.mxu1 %v1326_v7 }
 0x101   :  { %1120 = vmatmul.mubr.msk.f32.gmra.mrb[14].mxu1 %vm75_vm0, %v180_v23 }
 0x102   :  { %643 = vmatprep.mubr.f32.mxu1 %v1326_v7 }
 0x1c8   :  { %v259_v28 = vpop.f32.mrb[8].mxu1 }
 0x1c9   :  { %v261_v29 = vpop.f32.mrb[9].mxu1 }
 0x1cc   :  { %v265_v30 = vpop.f32.mrb[10].mxu1 }
 0x1cd   :  { %v282_v59 = vpack.c.bf16 %v265_v30, %v259_v28  ;;  %v267_v60 = vpop.f32.mrb[11].mxu1 }
 0x1ce   :  { %v283_v61 = vpack.c.bf16 %v267_v60, %v261_v29  ;;  %v340_v29 = vpop.permute.xlu1 %339 }
 0x1d0   :  { %v271_v62 = vpop.f32.mrb[12].mxu1  ;;  %534 = vmatprep.mubr.bf16.mxu0 %v283_v61 }
 0x1d1   :  { %v273_v63 = vpop.f32.mrb[13].mxu1  ;;  %535 = vmatmul.mubr.bf16.vlgmr.msra.gmra.mrb[0].mxu0 %v282_v59 }
 0x1d2   :  { %1041 = vmatpush1.bf16.msra.mxu0 %v1484_v32 }
 0x1d3   :  { %1042 = vmatprep.subr.bf16.mxu0 %v1489_v33 }
 0x1d4   :  { %v277_v0 = vpop.f32.mrb[14].mxu1 }
 0x1d5   :  { %v284_v1 = vpack.c.bf16 %v277_v0, %v271_v62  ;;  %v279_v2 = vpop.f32.mrb[15].mxu1 }
 0x1d6   :  { %v285_v3 = vpack.c.bf16 %v279_v2, %v273_v63  ;;  %1043 = vmatpush1.bf16.msra.mxu0 %v1496_v34 }
 0x1d7   :  { %1044 = vmatprep.subr.bf16.mxu0 %v1502_v35 }
 0x1d8   :  { %544 = vmatprep.mubr.bf16.mxu0 %v285_v3 }
 0x1d9   :  { %545 = vmatmul.mubr.bf16.gmra.mrb[4].mxu0 %v284_v1 }
 0x1da   :  { %1045 = vmatpush1.bf16.msra.mxu0 %v1508_v36 }
 0x1db   :  { %1046 = vmatprep.subr.bf16.mxu0 %v1514_v37 }
 0x1de   :  { %1047 = vmatpush1.bf16.msra.mxu0 %v1520_v38 }
 0x1df   :  { %1048 = vmatprep.subr.bf16.mxu0 %v1526_v39 }
 0x1e2   :  { %1049 = vmatpush1.bf16.msra.mxu0 %v1532_v40 }
 0x1e3   :  { %1050 = vmatprep.subr.bf16.mxu0 %v1538_v41 }
 0x1e6   :  { %1051 = vmatpush1.bf16.msra.mxu0 %v1544_v42 }
 0x1e7   :  { %1052 = vmatprep.subr.bf16.mxu0 %v1550_v43 }
 0x1ea   :  { %1053 = vmatpush1.bf16.msra.mxu0 %v1556_v44 }
 0x1eb   :  { %1054 = vmatprep.subr.bf16.mxu0 %v1562_v45 }
 0x1ee   :  { %1055 = vmatpush1.bf16.msra.mxu0 %v1568_v46 }
 0x1ef   :  { %1056 = vmatprep.subr.bf16.mxu0 %v1574_v47 }
 0x1f2   :  { %1057 = vmatpush1.bf16.msra.mxu0 %v1580_v48 }
 0x1f3   :  { %1058 = vmatprep.subr.bf16.mxu0 %v1586_v49 }
 0x1f6   :  { %1059 = vmatpush1.bf16.msra.mxu0 %v1592_v50 }
 0x1f7   :  { %1060 = vmatprep.subr.bf16.mxu0 %v1598_v51 }
 0x1fa   :  { %1061 = vmatpush1.bf16.msra.mxu0 %v1604_v52 }
 0x1fb   :  { %1062 = vmatprep.subr.bf16.mxu0 %v1610_v53 }
 0x1fe   :  { %1063 = vmatpush1.bf16.msra.mxu0 %v1616_v54 }
 0x1ff   :  { %1064 = vmatprep.subr.bf16.mxu0 %v1622_v55 }
 0x202   :  { %1065 = vmatpush1.bf16.msra.mxu0 %v1628_v56 }
 0x203   :  { %1066 = vmatprep.subr.bf16.mxu0 %v1634_v57 }
 0x206   :  { %1067 = vmatpush1.bf16.msra.mxu0 %v1640_v58 }
 0x207   :  { %1068 = vmatprep.subr.bf16.mxu0 %v1667_v24 }
 0x20a   :  { %1069 = vmatpush1.bf16.msra.mxu0 %v1672_v25 }
 0x20b   :  { %1070 = vmatprep.subr.bf16.mxu0 %v1679_v26 }
 0x20e   :  { %1071 = vmatpush1.bf16.msra.mxu0 %v1684_v27 }
 0x2a4   :  { %v536_v5 = vpop.f32.mrb[0].mxu0 }
 0x2a5   :  { %v537_v6 = vadd.f32 %v536_v5, %v325_v4  ;;  %v538_v8 = vpop.f32.mrb[1].mxu0  ;;  %v563_v5 = vld [vmem:[%s1806_s6] sm:$0xff] }
 0x2a6   :  { %v539_v10 = vadd.f32 %v538_v8, %v325_v4  ;;  %v540_v11 = vpop.f32.mrb[2].mxu0 }
 0x2a7   :  { %v541_v12 = vadd.f32 %v540_v11, %v330_v9  ;;  %v542_v13 = vpop.f32.mrb[3].mxu0  ;;  %v555_v15 = vmax.f32 %v537_v6, 0.0  ;;  %v564_v6 = vld [vmem:[%s1806_s6 + $0x8] sm:$0xff] }
 0x2a8   :  { %v543_v14 = vadd.f32 %v542_v13, %v330_v9  ;;  %v556_v17 = vmax.f32 %v539_v10, 0.0 }
 0x2a9   :  { %v557_v16 = vmax.f32 %v541_v12, 0.0 }
 0x2aa   :  { %v558_v18 = vmax.f32 %v543_v14, 0.0 }
 0x2ab   :  { %v1208_v19 = vpack.c.bf16 %v557_v16, %v555_v15 }
 0x2ac   :  { %v1206_v21 = vpack.c.bf16 %v558_v18, %v556_v17  ;;  %v546_v22 = vpop.f32.mrb[4].mxu0 }
 0x2ad   :  { %v547_v23 = vadd.f32 %v546_v22, %v335_v20  ;;  %v548_v28 = vpop.f32.mrb[5].mxu0 }
 0x2ae   :  { %v549_v30 = vadd.f32 %v548_v28, %v335_v20  ;;  %v550_v59 = vpop.f32.mrb[6].mxu0  ;;  %1207 = vmatprep.subr.bf16.mxu1 %v1206_v21  ;;  %v765_v21 = vld [vmem:[%s1808_s8] sm:$0xff] }
 0x2af   :  { %v551_v60 = vadd.f32 %v550_v59, %v340_v29  ;;  %v552_v61 = vpop.f32.mrb[7].mxu0  ;;  %1209 = vmatpush1.bf16.msra.mxu1 %v1208_v19  ;;  %v559_v63 = vmax.f32 %v547_v23, 0.0 }
 0x2b0   :  { %v553_v62 = vadd.f32 %v552_v61, %v340_v29  ;;  %v560_v1 = vmax.f32 %v549_v30, 0.0 }
 0x2b1   :  { %v561_v0 = vmax.f32 %v551_v60, 0.0 }
 0x2b2   :  { %v562_v2 = vmax.f32 %v553_v62, 0.0 }
 0x2b3   :  { %v1212_v3 = vpack.c.bf16 %v561_v0, %v559_v63 }
 0x2b4   :  { %v1210_v4 = vpack.c.bf16 %v562_v2, %v560_v1 }
 0x2b6   :  { %1211 = vmatprep.subr.bf16.mxu1 %v1210_v4 }
 0x2b7   :  { %1213 = vmatpush1.bf16.msra.mxu1 %v1212_v3 }
 0x2b8   :  { %696 = vmatprep.subr.bf16.mxu1 %v1479_v31  ;;  %v565_v31 = vld [vmem:[%s1806_s6 + $0x10] sm:$0xff] }
 0x2ba   :  { %1153 = vmatmul.mubr.msk.f32.vlgmr.msra.gmra.mrb[16].mxu1 %vm75_vm0, %v563_v5 }
 0x2bb   :  { %649 = vmatprep.mubr.f32.mxu1 %v1326_v7  ;;  %697 = vmatpush1.bf16.msra.mxu1 %v1484_v32  ;;  %v566_v32 = vld [vmem:[%s1806_s6 + $0x18] sm:$0xff] }
 0x2bc   :  { %698 = vmatprep.subr.bf16.mxu1 %v1489_v33 }
 0x2be   :  { %1154 = vmatmul.mubr.msk.f32.gmra.mrb[18].mxu1 %vm75_vm0, %v564_v6 }
 0x2bf   :  { %655 = vmatprep.mubr.f32.mxu1 %v1326_v7  ;;  %699 = vmatpush1.bf16.msra.mxu1 %v1496_v34 }
 0x2c0   :  { %700 = vmatprep.subr.bf16.mxu1 %v1502_v35 }
 0x2c2   :  { %1155 = vmatmul.mubr.msk.f32.gmra.mrb[20].mxu1 %vm75_vm0, %v565_v31 }
 0x2c3   :  { %661 = vmatprep.mubr.f32.mxu1 %v1326_v7  ;;  %701 = vmatpush1.bf16.msra.mxu1 %v1508_v36 }
 0x2c4   :  { %702 = vmatprep.subr.bf16.mxu1 %v1514_v37 }
 0x2c6   :  { %1156 = vmatmul.mubr.msk.f32.gmra.mrb[22].mxu1 %vm75_vm0, %v566_v32 }
 0x2c7   :  { %703 = vmatpush1.bf16.msra.mxu1 %v1520_v38 }
 0x2c8   :  { %704 = vmatprep.subr.bf16.mxu1 %v1526_v39 }
 0x2cb   :  { %705 = vmatpush1.bf16.msra.mxu1 %v1532_v40 }
 0x2cc   :  { %706 = vmatprep.subr.bf16.mxu1 %v1538_v41 }
 0x2cf   :  { %707 = vmatpush1.bf16.msra.mxu1 %v1544_v42 }
 0x2d0   :  { %708 = vmatprep.subr.bf16.mxu1 %v1550_v43 }
 0x2d3   :  { %709 = vmatpush1.bf16.msra.mxu1 %v1556_v44 }
 0x2d4   :  { %710 = vmatprep.subr.bf16.mxu1 %v1562_v45  ;;  %v679_v45 = vpop.permute.xlu0 %678 }
 0x2d7   :  { %711 = vmatpush1.bf16.msra.mxu1 %v1568_v46 }
 0x2d8   :  { %712 = vmatprep.subr.bf16.mxu1 %v1574_v47 }
 0x2db   :  { %713 = vmatpush1.bf16.msra.mxu1 %v1580_v48 }
 0x2dc   :  { %714 = vmatprep.subr.bf16.mxu1 %v1586_v49  ;;  %v684_v49 = vpop.permute.xlu1 %683 }
 0x2df   :  { %715 = vmatpush1.bf16.msra.mxu1 %v1592_v50 }
 0x2e0   :  { %716 = vmatprep.subr.bf16.mxu1 %v1598_v51  ;;  %v694_v9 = vpop.permute.xlu1 %693 }
 0x2e3   :  { %717 = vmatpush1.bf16.msra.mxu1 %v1604_v52 }
 0x2e4   :  { %718 = vmatprep.subr.bf16.mxu1 %v1610_v53 }
 0x2e7   :  { %719 = vmatpush1.bf16.msra.mxu1 %v1616_v54 }
 0x2e8   :  { %720 = vmatprep.subr.bf16.mxu1 %v1622_v55 }
 0x2eb   :  { %721 = vmatpush1.bf16.msra.mxu1 %v1628_v56 }
 0x2ec   :  { %722 = vmatprep.subr.bf16.mxu1 %v1634_v57 }
 0x2ef   :  { %723 = vmatpush1.bf16.msra.mxu1 %v1640_v58 }
 0x2f0   :  { %724 = vmatprep.subr.bf16.mxu1 %v1667_v24 }
 0x2f3   :  { %725 = vmatpush1.bf16.msra.mxu1 %v1672_v25  ;;  %v689_v25 = vpop.permute.xlu0 %688 }
 0x2f4   :  { %726 = vmatprep.subr.bf16.mxu1 %v1679_v26 }
 0x2f7   :  { %727 = vmatpush1.bf16.msra.mxu1 %v1684_v27 }
 0x38d   :  { %v645_v33 = vpop.f32.mrb[16].mxu1 }
 0x38e   :  { %v647_v34 = vpop.f32.mrb[17].mxu1 }
 0x391   :  { %v651_v35 = vpop.f32.mrb[18].mxu1 }
 0x392   :  { %v668_v36 = vpack.c.bf16 %v651_v35, %v645_v33  ;;  %v653_v37 = vpop.f32.mrb[19].mxu1 }
 0x393   :  { %v669_v38 = vpack.c.bf16 %v653_v37, %v647_v34 }
 0x395   :  { %v657_v39 = vpop.f32.mrb[20].mxu1  ;;  %728 = vmatprep.mubr.bf16.mxu1 %v669_v38 }
 0x396   :  { %v659_v40 = vpop.f32.mrb[21].mxu1  ;;  %729 = vmatmul.mubr.bf16.vlgmr.msra.gmra.mrb[24].mxu1 %v668_v36 }
 0x399   :  { %v663_v41 = vpop.f32.mrb[22].mxu1 }
 0x39a   :  { %v670_v42 = vpack.c.bf16 %v663_v41, %v657_v39  ;;  %v665_v43 = vpop.f32.mrb[23].mxu1 }
 0x39b   :  { %v671_v44 = vpack.c.bf16 %v665_v43, %v659_v40 }
 0x39d   :  { %738 = vmatprep.mubr.bf16.mxu1 %v671_v44 }
 0x39e   :  { %739 = vmatmul.mubr.bf16.gmra.mrb[28].mxu1 %v670_v42 }
 0x39f   :  { %833 = vmatprep.mubr.f32.mxu1 %v1326_v7 }
 0x469   :  { %v730_v46 = vpop.f32.mrb[24].mxu1 }
 0x46a   :  { %v731_v47 = vadd.f32 %v730_v46, %v679_v45  ;;  %v732_v48 = vpop.f32.mrb[25].mxu1 }
 0x46b   :  { %v733_v50 = vadd.f32 %v732_v48, %v679_v45  ;;  %v734_v51 = vpop.f32.mrb[26].mxu1 }
 0x46c   :  { %v749_v52 = vmax.f32 %v731_v47, 0.0  ;;  %v735_v53 = vadd.f32 %v734_v51, %v684_v49  ;;  %v736_v54 = vpop.f32.mrb[27].mxu1 }
 0x46d   :  { %v750_v55 = vmax.f32 %v733_v50, 0.0  ;;  %v737_v56 = vadd.f32 %v736_v54, %v684_v49 }
 0x46e   :  { %757 = vst [vmem:[#allocation4] sm:$0xff] %v749_v52  ;;  %v751_v57 = vmax.f32 %v735_v53, 0.0 }
 0x46f   :  { %758 = vst [vmem:[#allocation4 + $0x8] sm:$0xff] %v750_v55  ;;  %v752_v58 = vmax.f32 %v737_v56, 0.0 }
 0x470   :  { %759 = vst [vmem:[#allocation4 + $0x10] sm:$0xff] %v751_v57  ;;  %v1216_v24 = vpack.c.bf16 %v751_v57, %v749_v52 }
 0x471   :  { %760 = vst [vmem:[#allocation4 + $0x18] sm:$0xff] %v752_v58  ;;  %v1214_v7 = vpack.c.bf16 %v752_v58, %v750_v55  ;;  %v740_v26 = vpop.f32.mrb[28].mxu1 }
 0x472   :  { %v741_v27 = vadd.f32 %v740_v26, %v689_v25  ;;  %v742_v8 = vpop.f32.mrb[29].mxu1 }
 0x473   :  { %v743_v10 = vadd.f32 %v742_v8, %v689_v25  ;;  %v744_v11 = vpop.f32.mrb[30].mxu1  ;;  %1215 = vmatprep.subr.bf16.mxu1 %v1214_v7 }
 0x474   :  { %v753_v12 = vmax.f32 %v741_v27, 0.0  ;;  %v745_v13 = vadd.f32 %v744_v11, %v694_v9  ;;  %v746_v14 = vpop.f32.mrb[31].mxu1  ;;  %1217 = vmatpush1.bf16.msra.mxu1 %v1216_v24 }
 0x475   :  { %v754_v15 = vmax.f32 %v743_v10, 0.0  ;;  %v747_v16 = vadd.f32 %v746_v14, %v694_v9 }
 0x476   :  { %761 = vst [vmem:[#allocation4 + $0x20] sm:$0xff] %v753_v12  ;;  %v755_v17 = vmax.f32 %v745_v13, 0.0 }
 0x477   :  { %762 = vst [vmem:[#allocation4 + $0x28] sm:$0xff] %v754_v15  ;;  %v756_v18 = vmax.f32 %v747_v16, 0.0 }
 0x478   :  { %763 = vst [vmem:[#allocation4 + $0x30] sm:$0xff] %v755_v17  ;;  %v1220_v19 = vpack.c.bf16 %v755_v17, %v753_v12 }
 0x479   :  { %764 = vst [vmem:[#allocation4 + $0x38] sm:$0xff] %v756_v18  ;;  %v1218_v20 = vpack.c.bf16 %v756_v18, %v754_v15 }
 0x47b   :  { %1219 = vmatprep.subr.bf16.mxu1 %v1218_v20 }
 0x47c   :  { %1221 = vmatpush1.bf16.msra.mxu1 %v1220_v19 }
 0x47f   :  { %1157 = vmatmul.mubr.msk.f32.vlgmr.msra.gmra.mrb[32].mxu1 %vm75_vm0, %v765_v21 }
 0x552   :  { %v835_v22 = vpop.f32.mrb[32].mxu1 }
 0x553   :  { %v837_v23 = vpop.f32.mrb[33].mxu1  ;;  %v840_v29 = vpack.c.bf16 %v835_v22, %v835_v22 }
 0x554   :  { %v841_v28 = vpack.c.bf16 %v837_v23, %v837_v23 }
 0x556   :  { %1072 = vmatprep.mubr.bf16.mxu0 %v841_v28 }
 0x557   :  { %1073 = vmatmul.mubr.bf16.vlgmr.msra.gmra.mrb[8].mxu0 %v840_v29 }
 0x558   :  { %1289 = shalt.err (!%p1286_p4)
}
 0x559   :  { %s1290_s29 = scalar_lea.hbm %s1811_s11, 1024 }
 0x55a   :  { %p1291_p5 = scmp.ne.s32.totalorder %s1811_s11, %s1290_s29  ;;  %p1294_p6 = scmp.lt.u32.totalorder %s1290_s29, %s1811_s11 }
 0x55c   :  { %p1296_p7 = pnand %p1294_p6, %p1291_p5 }
 0x55e   :  { %1299 = shalt.err (!%p1296_p7)
}
 0x55f   :  { %s1329_s15 = smov 256   ;;  %s1330_s16 = smov 16   ;;  %v878_v30 = vpop.permute.xlu0 %877 }
 0x560   :  { %1104 = dma.vmem_to_hbm [thread:$0]  %s1099_s28, 1024, %s1811_s11, [#allocation5], %s1329_s15, %s1329_s15, %s1330_s16  }
 0x561   :  { %s1331_s5 = smov [#allocation2]  }
 0x562   :  { %s1089_s19 = sshll.u32 %s1331_s5, 4  ;;  %s1090_s19 = int_to_ptr.vmem [resolvable:$true] %s1089_s19 }
 0x563   :  { %s1300_s4 = scalar_lea.vmem %s1090_s19, 256  ;;  %p1305_p9 = scmp.lt.s32.totalorder %s1090_s19, %s1090_s19 }
 0x564   :  { %p1301_p8 = scmp.ne.s32.totalorder %s1090_s19, %s1300_s4  ;;  %p1306_p10 = scmp.lt.s32.totalorder %s1300_s4, %s1300_s4 }
 0x566   :  { %p1307_p11 = por %p1306_p10, %p1305_p9 }
 0x568   :  { %p1308_p12 = pnand %p1307_p11, %p1301_p8 }
 0x62a   :  { %v1074_v59 = vpop.f32.mrb[8].mxu0 }
 0x62b   :  { %v1075_v60 = vadd.f32 %v1074_v59, %v878_v30  ;;  %v1076_v61 = vpop.f32.mrb[9].mxu0 }
 0x62c   :  { %v1077_v62 = vadd.f32 %v1076_v61, %v878_v30  ;;  %v1078_v63 = vpop.f32.mrb[10].mxu0 }
 0x62d   :  { %1081 = vst [vmem:[#allocation2] sm:$0xff] %v1075_v60  ;;  %v1079_v0 = vpop.f32.mrb[11].mxu0 }
 0x62e   :  { %1082 = vst [vmem:[#allocation2 + $0x8] sm:$0xff] %v1077_v62 }
 0x62f   :  { %1311 = shalt.err (!%p1308_p12)
}
 0x630   :  { %s1312_s20 = scalar_lea.hbm %s1810_s10, 256 }
 0x631   :  { %p1313_p13 = scmp.ne.s32.totalorder %s1810_s10, %s1312_s20  ;;  %p1316_p0 = scmp.lt.u32.totalorder %s1312_s20, %s1810_s10 }
 0x633   :  { %p1318_p1 = pnand %p1316_p0, %p1313_p13 }
 0x635   :  { %1321 = shalt.err (!%p1318_p1)
}
 0x636   :  { %1092 = dma.vmem_to_hbm [thread:$0]  %s1090_s19, 256, %s1810_s10, [#allocation3]  }
 0x637   :  { %1322 = dma.done.wait [#allocation3], 256  }
 0x638   :  { %1323 = vsyncadd [#allocation3], 4294967040 }
 0x639   :  { %1324 = dma.done.wait [#allocation5], 1024  }
 0x63a   :  { %1325 = vsyncadd [#allocation5], 4294966272 }
 0x63b   :  { %1111 = vsyncpa [#allocation3], 1 }
 0x63c   :  { %1112 = vsyncpa [#allocation5], 1 }

</bundles_post_ra>
